<compile_context>
chip_gen: v7x
topology: tpu7x:2x2x1
jax: 0.10.0
libtpu: 0.0.40
codegen_flags: <defaults>
</compile_context>

<pallas_src>
import functools

import jax
import jax.numpy as jnp
from jax.experimental import pallas as pl
from jax.experimental.pallas import tpu as pltpu


def _cdiv(a: int, b: int) -> int:
    return (a + b - 1) // b


def _round_up(x: int, m: int) -> int:
    return ((x + m - 1) // m) * m


def _per_core_vmem_bytes() -> int:
    """Per-TensorCore VMEM capacity; conservative fallback if unqueryable."""
    cap = 64 * 1024 * 1024  # v7x per-TC fallback
    try:
        info = pltpu.get_tpu_info()
        cap = int(info.vmem_capacity_bytes)
    except Exception:
        return cap
    try:
        cores = 0
        for name in ("num_tensorcores", "tensorcores_per_chip", "num_cores",
                     "cores_per_chip"):
            v = getattr(info, name, None)
            if isinstance(v, int) and v > 0:
                cores = v
                break
        if cores > 1:
            cap //= cores           # reported value was per-chip; normalize to per-TC
        elif cores == 0:
            kind = str(getattr(jax.devices()[0], "device_kind", "")).lower()
            if "v7" in kind:
                cap //= 2           # cannot tell per-chip vs per-TC: be conservative
    except Exception:
        pass
    return max(cap, 16 * 1024 * 1024)


def _sublane_mult(itemsize: int) -> int:
    # 8 for f32, 16 for bf16/f16, 32 for 8-bit types (sublane packing).
    return 8 * max(1, 4 // max(1, itemsize))


def _choose_tiles(n_rows: int, n_cols: int, itemsize: int):
    """Pick (row_tile, col_tile) sized against per-TensorCore VMEM."""
    budget = int(_per_core_vmem_bytes() * 0.5)   # headroom for compiler scratch
    # Resident bytes per (row, col) element: 2 operands x 2 pipeline buffers of the
    # input dtype plus ~4 full-tile f32 temporaries inside the kernel body.
    per_elem = 2 * 2 * itemsize + 4 * 4
    sub = _sublane_mult(itemsize)

    # Rows: roofline saturates ~512-row tiles; keep >= 2 row tiles so both v7x
    # TensorCores get work; keep the tile a multiple of the sublane packing.
    row_tile = min(512, _round_up(n_rows, sub))
    if n_rows > sub:
        row_tile = min(row_tile, _round_up(_cdiv(n_rows, 2), sub))
    row_tile = max(sub, (row_tile // sub) * sub)

    # Columns: full C if it fits; otherwise tile classes in multiples of 128
    # (online-softmax path), shrinking rows first if even 128 columns do not fit.
    if row_tile * n_cols * per_elem <= budget:
        return row_tile, n_cols
    while row_tile > sub and row_tile * 128 * per_elem > budget:
        row_tile = max(sub, ((row_tile // 2) // sub) * sub)
    max_cols = max(128, budget // (row_tile * per_elem))
    col_tile = max(128, (max_cols // 128) * 128)
    if col_tile >= n_cols:
        col_tile = n_cols
    return row_tile, col_tile


def _distill_ce_kernel(x_ref, t_ref, o_ref,
                       xm_sc, xs_sc, tm_sc, ts_sc, td_sc,
                       *, inv_t, n_rows, n_cols, row_tile, col_tile, mask_cols):
    i = pl.program_id(0)          # row-tile index ("parallel")
    j = pl.program_id(1)          # class-tile index ("arbitrary" reduction)

    @pl.when(j == 0)
    def _init():
        xm_sc[...] = jnp.full(xm_sc.shape, -jnp.inf, dtype=xm_sc.dtype)
        tm_sc[...] = jnp.full(tm_sc.shape, -jnp.inf, dtype=tm_sc.dtype)
        xs_sc[...] = jnp.zeros(xs_sc.shape, dtype=xs_sc.dtype)
        ts_sc[...] = jnp.zeros(ts_sc.shape, dtype=ts_sc.dtype)
        td_sc[...] = jnp.zeros(td_sc.shape, dtype=td_sc.dtype)

    # Raw logits in f32; the temperature is folded into the exp arguments below,
    # so no scaled (R, C) copies are materialized.
    x = x_ref[...].astype(jnp.float32)
    t = t_ref[...].astype(jnp.float32)

    if mask_cols:  # static: only when the last class block overhangs C
        col_ids = jax.lax.broadcasted_iota(jnp.int32, x.shape, 1) + j * col_tile
        valid = col_ids < n_cols
        x_red = jnp.where(valid, x, -jnp.inf)   # excluded from max / exp-sum
        x_dot = jnp.where(valid, x, 0.0)        # excluded from the dot (p is 0 there)
        t_red = jnp.where(valid, t, -jnp.inf)
    else:
        x_red = x
        x_dot = x
        t_red = t

    # Online log-sum-exp of inputs / T.
    xm_old = xm_sc[...]
    xm_new = jnp.maximum(xm_old, jnp.max(x_red, axis=1, keepdims=True))
    x_scale = jnp.exp((xm_old - xm_new) * inv_t)
    xs_sc[...] = x_scale * xs_sc[...] + jnp.sum(
        jnp.exp((x_red - xm_new) * inv_t), axis=1, keepdims=True)
    xm_sc[...] = xm_new

    # Online softmax(target / T) statistics: normalizer and expectation of x.
    tm_old = tm_sc[...]
    tm_new = jnp.maximum(tm_old, jnp.max(t_red, axis=1, keepdims=True))
    t_scale = jnp.exp((tm_old - tm_new) * inv_t)
    p = jnp.exp((t_red - tm_new) * inv_t)
    ts_sc[...] = t_scale * ts_sc[...] + jnp.sum(p, axis=1, keepdims=True)
    td_sc[...] = t_scale * td_sc[...] + jnp.sum(p * x_dot, axis=1, keepdims=True)
    tm_sc[...] = tm_new

    @pl.when(j == pl.num_programs(1) - 1)
    def _finalize():
        lse = jnp.log(xs_sc[...])
        den = ts_sc[...]                       # >= 1, well conditioned
        r = pl.reciprocal(den, approx=True)    # EUP; one Newton step -> ~f32 accuracy
        r = r * (2.0 - den * r)
        loss_rows = inv_t * xm_sc[...] + lse - inv_t * td_sc[...] * r

        # Discard rows that exist only because the last row block overhangs the
        # batch.  Keep this a SELECT (jnp.where), not a multiply: garbage rows may
        # carry NaN/Inf which a multiply would propagate.
        row_ids = (jax.lax.broadcasted_iota(jnp.int32, loss_rows.shape, 0)
                   + i * row_tile)
        loss_rows = jnp.where(row_ids < n_rows, loss_rows, 0.0)

        o_ref[...] = jnp.full(o_ref.shape, jnp.sum(loss_rows), dtype=o_ref.dtype)


def distill_cross_entropy(inputs, target, T, *, row_tile=None, col_tile=None):
    """Pallas TPU implementation of distillCrossEntropy(T).forward(inputs, target)."""
    assert inputs.shape == target.shape and inputs.ndim == 2
    N, C = inputs.shape
    itemsize = jnp.dtype(inputs.dtype).itemsize
    sub = _sublane_mult(itemsize)

    auto_rt, auto_ct = _choose_tiles(N, C, itemsize)
    rt = auto_rt if row_tile is None else max(sub, _round_up(int(row_tile), sub))
    ct = auto_ct if col_tile is None else int(col_tile)
    rt = min(rt, _round_up(N, sub))
    ct = min(ct, C)
    assert ct == C or ct % 128 == 0, "class tile must be full C or a multiple of 128"

    num_row_tiles = _cdiv(N, rt)
    num_col_tiles = _cdiv(C, ct)
    mask_cols = (C % ct) != 0

    # Explicit VMEM budget: pipelined input/output buffers + f32 temporaries + scratch.
    in_buffers = 2 * 2 * rt * ct * itemsize
    out_buffers = 2 * 8 * 128 * 4
    temps = 4 * rt * ct * 4
    scratch = 5 * rt * 128 * 4           # (rt, 1) f32 scratch pads to 128 lanes
    needed = in_buffers + out_buffers + temps + scratch
    cap = _per_core_vmem_bytes()
    vmem_limit = min(int(cap * 0.9), max(2 * needed, 32 * 1024 * 1024))
    vmem_limit = max(vmem_limit, min(needed + (2 << 20), int(cap * 0.95)))

    kernel = functools.partial(
        _distill_ce_kernel,
        inv_t=float(1.0 / T), n_rows=N, n_cols=C,
        row_tile=rt, col_tile=ct, mask_cols=mask_cols,
    )

    partials = pl.pallas_call(
        kernel,
        out_shape=jax.ShapeDtypeStruct((num_row_tiles, 8, 128), jnp.float32),
        grid_spec=pltpu.PrefetchScalarGridSpec(
            num_scalar_prefetch=0,
            grid=(num_row_tiles, num_col_tiles),
            in_specs=[
                pl.BlockSpec((rt, ct), lambda i, j: (i, j)),
                pl.BlockSpec((rt, ct), lambda i, j: (i, j)),
            ],
            out_specs=pl.BlockSpec((1, 8, 128), lambda i, j: (i, 0, 0)),
            scratch_shapes=[pltpu.VMEM((rt, 1), jnp.float32)] * 5,
        ),
        compiler_params=pltpu.CompilerParams(
            dimension_semantics=("parallel", "arbitrary"),
            vmem_limit_bytes=int(vmem_limit),
        ),
    )(inputs, target)

    # Trivial trailing reduction in plain XLA (one lane-dense partial per row tile).
    return jnp.sum(partials[:, 0, 0]) / jnp.float32(N)


def _reference(inputs, target, T):
    x = inputs.astype(jnp.float32) / T
    t = target.astype(jnp.float32) / T
    log_sm = jax.nn.log_softmax(x, axis=1)
    sm_t = jax.nn.softmax(t, axis=1)
    return jnp.sum(-log_sm * sm_t) / inputs.shape[0]


if __name__ == "__main__":
    key = jax.random.PRNGKey(0)
    k1, k2, k3, k4, k5, k6 = jax.random.split(key, 6)

    T = 4.0  # distillation temperature

    # (sample_num, class_num) logit matrices, as implied by the PyTorch module.
    N, C = 16, 32
    inputs = jax.random.normal(k1, (N, C), dtype=jnp.float32) * 3.0
    target = jax.random.normal(k2, (N, C), dtype=jnp.float32) * 3.0
    loss = jax.block_until_ready(distill_cross_entropy(inputs, target, T))
    ref = _reference(inputs, target, T)
    assert jnp.allclose(loss, ref, rtol=1e-5, atol=1e-5), (loss, ref)

    # Ragged batch: last row block overhangs (no padding copy), masked in-kernel.
    N2, C2 = 21, 32
    inputs2 = jax.random.normal(k3, (N2, C2), dtype=jnp.float32) * 3.0
    target2 = jax.random.normal(k4, (N2, C2), dtype=jnp.float32) * 3.0
    loss2 = jax.block_until_ready(
        distill_cross_entropy(inputs2, target2, T, row_tile=8))
    ref2 = _reference(inputs2, target2, T)
    assert jnp.allclose(loss2, ref2, rtol=1e-5, atol=1e-5), (loss2, ref2)

    # bf16 logits at the call site (halves HBM bytes on v5e/v6e); math stays f32.
    inputs3 = inputs.astype(jnp.bfloat16)
    target3 = target.astype(jnp.bfloat16)
    loss3 = jax.block_until_ready(distill_cross_entropy(inputs3, target3, T))
    ref3 = _reference(inputs3, target3, T)
    assert jnp.allclose(loss3, ref3, rtol=3e-3, atol=3e-3), (loss3, ref3)

    # Class-dimension tiling path (online softmax) with a ragged class count.
    N4, C4 = 12, 200
    inputs4 = jax.random.normal(k5, (N4, C4), dtype=jnp.float32) * 3.0
    target4 = jax.random.normal(k6, (N4, C4), dtype=jnp.float32) * 3.0
    loss4 = jax.block_until_ready(
        distill_cross_entropy(inputs4, target4, T, row_tile=8, col_tile=128))
    ref4 = _reference(inputs4, target4, T)
    assert jnp.allclose(loss4, ref4, rtol=1e-4, atol=1e-4), (loss4, ref4)

    print("KERNEL_OK")
</pallas_src>

<mosaic_0001>
module attributes {stable_mosaic.version = 11 : i64} {
  func.func @_distill_ce_kernel(%arg0: i32, %arg1: i32, %arg2: memref<8x32xf32, #tpu.memory_space<vmem>>, %arg3: memref<8x32xf32, #tpu.memory_space<vmem>>, %arg4: memref<1x8x128xf32, #tpu.memory_space<vmem>>, %arg5: memref<8x1xf32, #tpu.memory_space<vmem>>, %arg6: memref<8x1xf32, #tpu.memory_space<vmem>>, %arg7: memref<8x1xf32, #tpu.memory_space<vmem>>, %arg8: memref<8x1xf32, #tpu.memory_space<vmem>>, %arg9: memref<8x1xf32, #tpu.memory_space<vmem>>) attributes {dimension_semantics = [#tpu.dimension_semantics<parallel>, #tpu.dimension_semantics<arbitrary>], iteration_bounds = array<i64: 2, 1>, scalar_prefetch = 0 : i64, scratch_operands = 5 : i64, tpu.core_type = #tpu.core_type<tc>, window_params = [{transform_indices = @transform_0, window_bounds = array<i64: 8, 32>}, {transform_indices = @transform_1, window_bounds = array<i64: 8, 32>}, {transform_indices = @transform_2, window_bounds = array<i64: 1, 8, 128>}]} {
    %c0_i32 = arith.constant 0 : i32
    %0 = arith.cmpi eq, %arg1, %c0_i32 : i32
    %1 = arith.extui %0 : i1 to i32
    %c0_i32_0 = arith.constant 0 : i32
    %2 = arith.cmpi ne, %1, %c0_i32_0 : i32
    scf.if %2 {
      %cst_34 = arith.constant 0xFF800000 : f32
      %55 = vector.broadcast %cst_34 : f32 to vector<8x1xf32>
      %c0_35 = arith.constant 0 : index
      %c0_36 = arith.constant 0 : index
      %56 = vector.load %arg5[%c0_35, %c0_36] : memref<8x1xf32, #tpu.memory_space<vmem>>, vector<8x1xf32>
      tpu.vector_store %arg5[%c0_35, %c0_36], %55 {strides = array<i32>} : memref<8x1xf32, #tpu.memory_space<vmem>>, vector<8x1xf32>,
      %cst_37 = arith.constant 0xFF800000 : f32
      %57 = vector.broadcast %cst_37 : f32 to vector<8x1xf32>
      %c0_38 = arith.constant 0 : index
      %c0_39 = arith.constant 0 : index
      %58 = vector.load %arg7[%c0_38, %c0_39] : memref<8x1xf32, #tpu.memory_space<vmem>>, vector<8x1xf32>
      tpu.vector_store %arg7[%c0_38, %c0_39], %57 {strides = array<i32>} : memref<8x1xf32, #tpu.memory_space<vmem>>, vector<8x1xf32>,
      %cst_40 = arith.constant 0.000000e+00 : f32
      %59 = vector.broadcast %cst_40 : f32 to vector<8x1xf32>
      %c0_41 = arith.constant 0 : index
      %c0_42 = arith.constant 0 : index
      %60 = vector.load %arg6[%c0_41, %c0_42] : memref<8x1xf32, #tpu.memory_space<vmem>>, vector<8x1xf32>
      tpu.vector_store %arg6[%c0_41, %c0_42], %59 {strides = array<i32>} : memref<8x1xf32, #tpu.memory_space<vmem>>, vector<8x1xf32>,
      %cst_43 = arith.constant 0.000000e+00 : f32
      %61 = vector.broadcast %cst_43 : f32 to vector<8x1xf32>
      %c0_44 = arith.constant 0 : index
      %c0_45 = arith.constant 0 : index
      %62 = vector.load %arg8[%c0_44, %c0_45] : memref<8x1xf32, #tpu.memory_space<vmem>>, vector<8x1xf32>
      tpu.vector_store %arg8[%c0_44, %c0_45], %61 {strides = array<i32>} : memref<8x1xf32, #tpu.memory_space<vmem>>, vector<8x1xf32>,
      %cst_46 = arith.constant 0.000000e+00 : f32
      %63 = vector.broadcast %cst_46 : f32 to vector<8x1xf32>
      %c0_47 = arith.constant 0 : index
      %c0_48 = arith.constant 0 : index
      %64 = vector.load %arg9[%c0_47, %c0_48] : memref<8x1xf32, #tpu.memory_space<vmem>>, vector<8x1xf32>
      tpu.vector_store %arg9[%c0_47, %c0_48], %63 {strides = array<i32>} : memref<8x1xf32, #tpu.memory_space<vmem>>, vector<8x1xf32>,
    } else {
    }
    %c0 = arith.constant 0 : index
    %c0_1 = arith.constant 0 : index
    %3 = vector.load %arg2[%c0, %c0_1] : memref<8x32xf32, #tpu.memory_space<vmem>>, vector<8x32xf32>
    %c0_2 = arith.constant 0 : index
    %c0_3 = arith.constant 0 : index
    %4 = vector.load %arg3[%c0_2, %c0_3] : memref<8x32xf32, #tpu.memory_space<vmem>>, vector<8x32xf32>
    %c0_4 = arith.constant 0 : index
    %c0_5 = arith.constant 0 : index
    %5 = vector.load %arg5[%c0_4, %c0_5] : memref<8x1xf32, #tpu.memory_space<vmem>>, vector<8x1xf32>
    %cst = arith.constant dense<0xFF800000> : vector<8xf32>
    %6 = vector.multi_reduction <maximumf>, %3, %cst [1] : vector<8x32xf32> to vector<8xf32>
    %7 = vector.shape_cast %6 : vector<8xf32> to vector<8x1xf32>
    %8 = arith.maximumf %5, %7 : vector<8x1xf32>
    %9 = arith.subf %5, %8 : vector<8x1xf32>
    %cst_6 = arith.constant 2.500000e-01 : f32
    %10 = vector.broadcast %cst_6 : f32 to vector<8x1xf32>
    %11 = arith.mulf %9, %10 : vector<8x1xf32>
    %12 = math.exp %11 : vector<8x1xf32>
    %c0_7 = arith.constant 0 : index
    %c0_8 = arith.constant 0 : index
    %13 = vector.load %arg6[%c0_7, %c0_8] : memref<8x1xf32, #tpu.memory_space<vmem>>, vector<8x1xf32>
    %14 = arith.mulf %12, %13 : vector<8x1xf32>
    %15 = vector.broadcast %8 : vector<8x1xf32> to vector<8x32xf32>
    %16 = arith.subf %3, %15 : vector<8x32xf32>
    %cst_9 = arith.constant 2.500000e-01 : f32
    %17 = vector.broadcast %cst_9 : f32 to vector<8x32xf32>
    %18 = arith.mulf %16, %17 : vector<8x32xf32>
    %19 = math.exp %18 : vector<8x32xf32>
    %cst_10 = arith.constant dense<0.000000e+00> : vector<8xf32>
    %20 = vector.multi_reduction <add>, %19, %cst_10 [1] : vector<8x32xf32> to vector<8xf32>
    %21 = vector.shape_cast %20 : vector<8xf32> to vector<8x1xf32>
    %22 = arith.addf %14, %21 : vector<8x1xf32>
    %c0_11 = arith.constant 0 : index
    %c0_12 = arith.constant 0 : index
    %23 = vector.load %arg6[%c0_11, %c0_12] : memref<8x1xf32, #tpu.memory_space<vmem>>, vector<8x1xf32>
    tpu.vector_store %arg6[%c0_11, %c0_12], %22 {strides = array<i32>} : memref<8x1xf32, #tpu.memory_space<vmem>>, vector<8x1xf32>,
    %c0_13 = arith.constant 0 : index
    %c0_14 = arith.constant 0 : index
    %24 = vector.load %arg5[%c0_13, %c0_14] : memref<8x1xf32, #tpu.memory_space<vmem>>, vector<8x1xf32>
    tpu.vector_store %arg5[%c0_13, %c0_14], %8 {strides = array<i32>} : memref<8x1xf32, #tpu.memory_space<vmem>>, vector<8x1xf32>,
    %c0_15 = arith.constant 0 : index
    %c0_16 = arith.constant 0 : index
    %25 = vector.load %arg7[%c0_15, %c0_16] : memref<8x1xf32, #tpu.memory_space<vmem>>, vector<8x1xf32>
    %cst_17 = arith.constant dense<0xFF800000> : vector<8xf32>
    %26 = vector.multi_reduction <maximumf>, %4, %cst_17 [1] : vector<8x32xf32> to vector<8xf32>
    %27 = vector.shape_cast %26 : vector<8xf32> to vector<8x1xf32>
    %28 = arith.maximumf %25, %27 : vector<8x1xf32>
    %29 = arith.subf %25, %28 : vector<8x1xf32>
    %cst_18 = arith.constant 2.500000e-01 : f32
    %30 = vector.broadcast %cst_18 : f32 to vector<8x1xf32>
    %31 = arith.mulf %29, %30 : vector<8x1xf32>
    %32 = math.exp %31 : vector<8x1xf32>
    %33 = vector.broadcast %28 : vector<8x1xf32> to vector<8x32xf32>
    %34 = arith.subf %4, %33 : vector<8x32xf32>
    %cst_19 = arith.constant 2.500000e-01 : f32
    %35 = vector.broadcast %cst_19 : f32 to vector<8x32xf32>
    %36 = arith.mulf %34, %35 : vector<8x32xf32>
    %37 = math.exp %36 : vector<8x32xf32>
    %c0_20 = arith.constant 0 : index
    %c0_21 = arith.constant 0 : index
    %38 = vector.load %arg8[%c0_20, %c0_21] : memref<8x1xf32, #tpu.memory_space<vmem>>, vector<8x1xf32>
    %39 = arith.mulf %32, %38 : vector<8x1xf32>
    %cst_22 = arith.constant dense<0.000000e+00> : vector<8xf32>
    %40 = vector.multi_reduction <add>, %37, %cst_22 [1] : vector<8x32xf32> to vector<8xf32>
    %41 = vector.shape_cast %40 : vector<8xf32> to vector<8x1xf32>
    %42 = arith.addf %39, %41 : vector<8x1xf32>
    %c0_23 = arith.constant 0 : index
    %c0_24 = arith.constant 0 : index
    %43 = vector.load %arg8[%c0_23, %c0_24] : memref<8x1xf32, #tpu.memory_space<vmem>>, vector<8x1xf32>
    tpu.vector_store %arg8[%c0_23, %c0_24], %42 {strides = array<i32>} : memref<8x1xf32, #tpu.memory_space<vmem>>, vector<8x1xf32>,
    %c0_25 = arith.constant 0 : index
    %c0_26 = arith.constant 0 : index
    %44 = vector.load %arg9[%c0_25, %c0_26] : memref<8x1xf32, #tpu.memory_space<vmem>>, vector<8x1xf32>
    %45 = arith.mulf %32, %44 : vector<8x1xf32>
    %46 = arith.mulf %37, %3 : vector<8x32xf32>
    %cst_27 = arith.constant dense<0.000000e+00> : vector<8xf32>
    %47 = vector.multi_reduction <add>, %46, %cst_27 [1] : vector<8x32xf32> to vector<8xf32>
    %48 = vector.shape_cast %47 : vector<8xf32> to vector<8x1xf32>
    %49 = arith.addf %45, %48 : vector<8x1xf32>
    %c0_28 = arith.constant 0 : index
    %c0_29 = arith.constant 0 : index
    %50 = vector.load %arg9[%c0_28, %c0_29] : memref<8x1xf32, #tpu.memory_space<vmem>>, vector<8x1xf32>
    tpu.vector_store %arg9[%c0_28, %c0_29], %49 {strides = array<i32>} : memref<8x1xf32, #tpu.memory_space<vmem>>, vector<8x1xf32>,
    %c0_30 = arith.constant 0 : index
    %c0_31 = arith.constant 0 : index
    %51 = vector.load %arg7[%c0_30, %c0_31] : memref<8x1xf32, #tpu.memory_space<vmem>>, vector<8x1xf32>
    tpu.vector_store %arg7[%c0_30, %c0_31], %28 {strides = array<i32>} : memref<8x1xf32, #tpu.memory_space<vmem>>, vector<8x1xf32>,
    %c0_i32_32 = arith.constant 0 : i32
    %52 = arith.cmpi eq, %arg1, %c0_i32_32 : i32
    %53 = arith.extui %52 : i1 to i32
    %c0_i32_33 = arith.constant 0 : i32
    %54 = arith.cmpi ne, %53, %c0_i32_33 : i32
    scf.if %54 {
      %c0_34 = arith.constant 0 : index
      %c0_35 = arith.constant 0 : index
      %55 = vector.load %arg6[%c0_34, %c0_35] : memref<8x1xf32, #tpu.memory_space<vmem>>, vector<8x1xf32>
      %56 = math.log %55 : vector<8x1xf32>
      %c0_36 = arith.constant 0 : index
      %c0_37 = arith.constant 0 : index
      %57 = vector.load %arg8[%c0_36, %c0_37] : memref<8x1xf32, #tpu.memory_space<vmem>>, vector<8x1xf32>
      %58 = tpu.reciprocal %57 {approx = true} : vector<8x1xf32> -> vector<8x1xf32>
      %59 = arith.mulf %57, %58 : vector<8x1xf32>
      %cst_38 = arith.constant 2.000000e+00 : f32
      %60 = vector.broadcast %cst_38 : f32 to vector<8x1xf32>
      %61 = arith.subf %60, %59 : vector<8x1xf32>
      %62 = arith.mulf %58, %61 : vector<8x1xf32>
      %c0_39 = arith.constant 0 : index
      %c0_40 = arith.constant 0 : index
      %63 = vector.load %arg5[%c0_39, %c0_40] : memref<8x1xf32, #tpu.memory_space<vmem>>, vector<8x1xf32>
      %cst_41 = arith.constant 2.500000e-01 : f32
      %64 = vector.broadcast %cst_41 : f32 to vector<8x1xf32>
      %65 = arith.mulf %64, %63 : vector<8x1xf32>
      %66 = arith.addf %65, %56 : vector<8x1xf32>
      %c0_42 = arith.constant 0 : index
      %c0_43 = arith.constant 0 : index
      %67 = vector.load %arg9[%c0_42, %c0_43] : memref<8x1xf32, #tpu.memory_space<vmem>>, vector<8x1xf32>
      %cst_44 = arith.constant 2.500000e-01 : f32
      %68 = vector.broadcast %cst_44 : f32 to vector<8x1xf32>
      %69 = arith.mulf %68, %67 : vector<8x1xf32>
      %70 = arith.mulf %69, %62 : vector<8x1xf32>
      %71 = arith.subf %66, %70 : vector<8x1xf32>
      %72 = tpu.iota {dimensions = array<i32: 0>} : vector<8x1xi32>
      %c8_i32 = arith.constant 8 : i32
      %73 = arith.muli %arg0, %c8_i32 : i32
      %74 = vector.broadcast %73 : i32 to vector<8x1xi32>
      %75 = arith.addi %72, %74 : vector<8x1xi32>
      %c16_i32 = arith.constant 16 : i32
      %76 = vector.broadcast %c16_i32 : i32 to vector<8x1xi32>
      %77 = arith.cmpi slt, %75, %76 : vector<8x1xi32>
      %cst_45 = arith.constant 0.000000e+00 : f32
      %78 = vector.broadcast %cst_45 : f32 to vector<8x1xf32>
      %79 = arith.select %77, %71, %78 : vector<8x1xi1>, vector<8x1xf32>
      %80 = vector.shape_cast %79 : vector<8x1xf32> to vector<1x8x1xf32>
      %cst_46 = arith.constant dense<0.000000e+00> : vector<1xf32>
      %81 = vector.multi_reduction <add>, %80, %cst_46 [1, 2] : vector<1x8x1xf32> to vector<1xf32>
      %82 = vector.shape_cast %81 : vector<1xf32> to vector<1x1x1xf32>
      %83 = vector.extract %82[0, 0, 0] : f32 from vector<1x1x1xf32>
      %84 = vector.broadcast %83 : f32 to vector<1x8x128xf32>
      %c0_47 = arith.constant 0 : index
      %c0_48 = arith.constant 0 : index
      %c0_49 = arith.constant 0 : index
      %85 = vector.load %arg4[%c0_47, %c0_48, %c0_49] : memref<1x8x128xf32, #tpu.memory_space<vmem>>, vector<1x8x128xf32>
      tpu.vector_store %arg4[%c0_47, %c0_48, %c0_49], %84 {strides = array<i32>} : memref<1x8x128xf32, #tpu.memory_space<vmem>>, vector<1x8x128xf32>,
    } else {
    }
    return
  }
  func.func @transform_0(%arg0: i32, %arg1: i32) -> (i32, i32) {
    %c0_i32 = arith.constant 0 : i32
    return %arg0, %arg1 : i32, i32
  }
  func.func @transform_1(%arg0: i32, %arg1: i32) -> (i32, i32) {
    %c0_i32 = arith.constant 0 : i32
    return %arg0, %arg1 : i32, i32
  }
  func.func @transform_2(%arg0: i32, %arg1: i32) -> (i32, i32, i32) {
    %c0_i32 = arith.constant 0 : i32
    %c0_i32_0 = arith.constant 0 : i32
    %c0_i32_1 = arith.constant 0 : i32
    return %arg0, %c0_i32, %c0_i32_0 : i32, i32, i32
  }
}

</mosaic_0001>

<bundles_post_ra>
// kernel: tpu_custom_call.1
= control target key start
LH: loop header
LB: loop body
LE: loop exit
PB: predicated region body
PF: predicated region fallthrough
CT: control target
= control target key end

     0   :  { %7 = vsyncpa [#allocation8], 0  ;;  %s956_s0 = inlined_call_operand.hbm [shape: f32[16,32], index: 0, kind: input, shape index: {}]   ;;  %s957_s1 = inlined_call_operand.hbm [shape: f32[16,32], index: 1, kind: input, shape index: {}]   ;;  %s958_s2 = inlined_call_operand.hbm [shape: f32[2,8,128], index: 2, kind: output, shape index: {}]  }
   0x1   :  { %9 = vsyncpa [#allocation8 + $0x1], 0 }
   0x2   :  { %10 = vsyncpa [#allocation11], 0 }
   0x3   :  { %12 = vsyncpa [#allocation11 + $0x1], 0 }
   0x4   :  { %13 = vsyncpa [#allocation9], 0 }
   0x5   :  { %15 = vsyncpa [#allocation9 + $0x1], 0  ;;  %s714_s9 = smov 0   ;;  %s716_s10 = smov 0  }
   0x6   :  { %s718_s11 = smov 0   ;;  %s720_s12 = smov 0  }
   0x7   :  { %s722_s13 = smov 0   ;;  %s724_s14 = smov 0  }
   0x8 LB: > { %s442_s15 = sadd.s32 4294967295, %s691_s14   ;;  %s443_s16 = sadd.s32 4294967294, %s691_s14   ;;  %s691_s14 = sphi %s724_s14, %s21_s14   ;;  %s687_s13 = sphi %s722_s13, %s978_s13   ;;  %s683_s12 = sphi %s720_s12, %s977_s12   ;;  %s679_s11 = sphi %s718_s11, %s976_s11   ;;  %s675_s10 = sphi %s716_s10, %s975_s10   ;;  %s671_s9 = sphi %s714_s9, %s974_s9  }
   0x9   : > { %s33_s17 = sadd.s32 1, %s687_s13  ;;  %s42_s18 = sadd.s32 1, %s679_s11 }
   0xa   : > { %p35_p0 = scmp.ge.s32.totalorder %s33_s17, 2  ;;  %p49_p1 = scmp.ne.s32.totalorder %s679_s11, %s675_s10 }
   0xb   : > { %p50_p2 = scmp.eq.s32.totalorder %s691_s14, 0  ;;  %p55_p3 = scmp.ne.s32.totalorder %s675_s10, %s671_s9 }
   0xc   : > { %s980_s17 = smov (%p35_p0, %s33_s17), 0  ;;  %p56_p5 = scmp.eq.s32.totalorder %s442_s15, 0 }
   0xd   : > { %p755_p4 = por %p50_p2, %p49_p1  ;;  %s37_s20 = ssub.s32 %s687_s13, %s980_s17 }
   0xe   : > { %p107_p6 = scmp.eq.s32.totalorder %s442_s15, 1  ;;  %p40_p7 = scmp.eq.s32.totalorder %s37_s20, 0 }
   0xf   : > { %p761_p8 = por %p56_p5, %p55_p3  ;;  %p113_p10 = scmp.eq.s32.totalorder %s443_s16, 1 }
  0x10   : > { %p765_p9 = por %p107_p6, %p49_p1  ;;  %p478_p13 = scmp.lt.s32.totalorder %s691_s14, 2 }
  0x11   : > { %s962_s21 = scalar_select %p761_p8, 1, 0 }
  0x12   : > { %s963_s22 = scalar_select %p765_p9, 1, 0 }
  0x13   : > { %s770_s23 = scalar_select %p40_p7, %s679_s11, %s42_s18  }
  0x14   : > { %p772_p11 = por %p113_p10, %p55_p3  ;;  %s779_s25 = sand.u32 1, %s679_s11  }
  0x15   : > { %s446_s26 = sshll.u32 %s779_s25, 3  ;;  %s447_s27 = sshll.u32 %s687_s13, 7 }
  0x16   : > { %s964_s24 = scalar_select %p772_p11, 1, 0 }
  0x17   : > { %s788_s30 = scalar_lea.hbm %s956_s0, %s447_s27  ;;  %s137_s3 = scalar_lea.vmem [#allocation7], %s446_s26 }
  0x18   : > { %s145_s4 = sshll.u32 %s137_s3, 4  ;;  %p796_p0 = pnand %p478_p13, %p755_p4  ;;  %s792_s4 = int_to_ptr.vmem [resolvable:$true] %s145_s4 }
  0x19   : > { %s134_s6 = scalar_lea.sflag [#allocation8], %s779_s25  ;;  %s545_s7 = scalar_lea.hbm %s788_s30, 128 }
  0x1a   : > { %p546_p3 = scmp.ne.s32.totalorder %s788_s30, %s545_s7  ;;  %p547_p5 = pneg %p796_p0 }
  0x1b   : > { %s550_s16 = scalar_lea.hbm %s956_s0, 256  ;;  %p551_p4 = scmp.lt.u32.totalorder %s788_s30, %s956_s0 }
  0x1c   : > { %p548_p6 = pnand %p547_p5, %p546_p3  ;;  %p552_p10 = scmp.lt.u32.totalorder %s550_s16, %s545_s7 }
  0x1d   : > { %p554_p12 = scmp.lt.u32.totalorder %s545_s7, %s788_s30 }
  0x1e   : > { %p549_p7 = pneg %p548_p6  ;;  %p553_p13 = por %p552_p10, %p551_p4 }
  0x20   : > { %p555_p1 = por %p554_p12, %p553_p13 }
  0x22   : > { %p556_p2 = pnand %p555_p1, %p549_p7 }
  0x24   : > { %559 = shalt.err (!%p556_p2)
}
  0x25   : > { %s560_s20 = scalar_lea.vmem %s792_s4, 128  ;;  %s693_s28 = smov [#allocation7]  }
  0x26   : > { %p561_p3 = scmp.ne.s32.totalorder %s792_s4, %s560_s20  ;;  %s565_s29 = sshll.u32 %s693_s28, 4  ;;  %s566_s29 = int_to_ptr.vmem [resolvable:$false] %s565_s29 }
  0x27   : > { %s567_s3 = scalar_lea.vmem %s566_s29, 256  ;;  %p568_p9 = scmp.lt.s32.totalorder %s792_s4, %s566_s29 }
  0x28   : > { %p563_p6 = pnand %p561_p3, %p547_p5  ;;  %p569_p4 = scmp.lt.s32.totalorder %s567_s3, %s560_s20 }
  0x2a   : > { %p564_p11 = pneg %p563_p6  ;;  %p570_p10 = por %p569_p4, %p568_p9 }
  0x2c   : > { %p571_p12 = pnand %p570_p10, %p564_p11 }
  0x2e   : > { %574 = shalt.err (!%p571_p12)
}
  0x2f   : > { %470 = dma.hbm_to_vmem [thread:$0]  (!%p796_p0), %s788_s30, 128, %s792_s4, %s134_s6  }
  0x30   : > { %p966_p1 = scmp.lt.s32.totalorder %s691_s14, 3  ;;  %p967_p2 = scmp.ge.s32.totalorder %s691_s14, 1 }
  0x31   : > { %s841_s16 = scalar_lea.hbm %s957_s1, %s447_s27  ;;  %s156_s18 = scalar_lea.vmem [#allocation10], %s446_s26 }
  0x32   : > { %p832_p7 = pnand %p967_p2, %p966_p1  ;;  %s164_s19 = sshll.u32 %s156_s18, 4  ;;  %s165_s19 = int_to_ptr.vmem [resolvable:$true] %s164_s19 }
  0x33   : > { %s153_s30 = scalar_lea.sflag [#allocation11], %s779_s25  ;;  %s575_s4 = scalar_lea.hbm %s841_s16, 128 }
  0x34   : > { %s968_s7 = scalar_select %p832_p7, 1, 0 }
  0x35   : > { %p576_p9 = scmp.ne.s32.totalorder %s841_s16, %s575_s4  ;;  %s580_s27 = scalar_lea.hbm %s957_s1, 256 }
  0x36   : > { %p581_p3 = scmp.lt.u32.totalorder %s841_s16, %s957_s1  ;;  %p582_p6 = scmp.lt.u32.totalorder %s580_s27, %s575_s4 }
  0x37   : > { %p578_p11 = pnand %p576_p9, %p547_p5  ;;  %p584_p10 = scmp.lt.u32.totalorder %s575_s4, %s841_s16 }
  0x38   : > { %p583_p4 = por %p582_p6, %p581_p3 }
  0x39   : > { %p579_p13 = pneg %p578_p11 }
  0x3a   : > { %p585_p12 = por %p584_p10, %p583_p4 }
  0x3c   : > { %p586_p1 = pnand %p585_p12, %p579_p13 }
  0x3e   : > { %589 = shalt.err (!%p586_p1)
}
  0x3f   : > { %s590_s25 = scalar_lea.vmem %s165_s19, 128  ;;  %s694_s26 = smov [#allocation10]  }
  0x40   : > { %p591_p2 = scmp.ne.s32.totalorder %s165_s19, %s590_s25  ;;  %s595_s3 = sshll.u32 %s694_s26, 4  ;;  %s596_s3 = int_to_ptr.vmem [resolvable:$false] %s595_s3 }
  0x41   : > { %s597_s8 = scalar_lea.vmem %s596_s3, 256  ;;  %p598_p8 = scmp.lt.s32.totalorder %s165_s19, %s596_s3 }
  0x42   : > { %p593_p9 = pnand %p591_p2, %p547_p5  ;;  %p599_p7 = scmp.lt.s32.totalorder %s597_s8, %s590_s25 }
  0x44   : > { %p594_p11 = pneg %p593_p9  ;;  %p600_p3 = por %p599_p7, %p598_p8 }
  0x46   : > { %p601_p6 = pnand %p600_p3, %p594_p11 }
  0x48   : > { %604 = shalt.err (!%p601_p6)
}
  0x49   : > { %473 = dma.hbm_to_vmem [thread:$0]  (!%p796_p0), %s841_s16, 128, %s165_s19, %s153_s30  }
  0x4a   : > { %p969_p13 = scmp.ne.s32.totalorder %s968_s7, 0 }
  0x4b   : > { %s868_s15 = sand.u32 (!%p969_p13), 1, %s675_s10   ;;  %p970_p8 = scmp.ne.s32.totalorder (!%p969_p13), %s962_s21, 0 }
  0x4c   : > { %173 = sbr.rel (%p969_p13) target bundleno = 772 (0x304), region = 28  ;;  %s871_s18 = sshll.u32 (!%p969_p13), %s868_s15, 3 }
  0x4d   : > { %s176_s4 = scalar_lea.sflag (!%p969_p13), [#allocation8], %s868_s15  ;;  %s179_s6 = scalar_lea.vmem (!%p969_p13), [#allocation7], %s871_s18 }
  0x53   : > { %658 = dma.done.wait (%p970_p8), %s176_s4, 128  }
  0x54   : > { %660 = vsyncadd (%p970_p8), %s176_s4, 4294967168  ;;  %s185_s5 = scalar_lea.sflag [#allocation11], %s868_s15  ;;  %s188_s7 = scalar_lea.vmem [#allocation10], %s871_s18 }
  0x55   : > { %662 = dma.done.wait (%p970_p8), %s185_s5, 128  }
  0x56   : > { %664 = vsyncadd (%p970_p8), %s185_s5, 4294967168  ;;  %vm218_vm0 = vcmask 7168   ;;  %v695_v0 = vmov -inf   ;;  %vm227_vm1 = vcmask 261120   ;;  %v225_v1 = vld [vmem:[%s188_s7] sm:$0xff]  ;;  %v224_v2 = vld [vmem:[%s179_s6] sm:$0xff]  ;;  %v306_v49 = vlaneseq }
  0x57   : > { %220 = vst.msk [vmem:[#allocation4] sm:$0xff] %vm218_vm0, %v695_v0  ;;  %219 = vst.msk [vmem:[#allocation2] sm:$0xff] %vm218_vm0, %v695_v0  ;;  %v255_v3 = vsel %vm227_vm1, %v225_v1, -inf  ;;  %v228_v4 = vsel %vm227_vm1, %v224_v2, -inf  ;;  %v696_v5 = vmov 0   ;;  %v697_v6 = vmov 0.0  }
  0x58   : > { %256 = vmax.xlane.f32.xlu0 %v255_v3  ;;  %531 = vset.pattern.permute.xlu1 %v696_v5  ;;  %222 = vst.msk [vmem:[#allocation5] sm:$0xff] %vm218_vm0, %v697_v6  ;;  %221 = vst.msk [vmem:[#allocation3] sm:$0xff] %vm218_vm0, %v697_v6  ;;  %s454_s21 = sshll.u32 %s683_s12, 3  ;;  %v307_v51 = vshrl.u32 %v306_v49, 7  ;;  %s213_s16 = scalar_lea.vmem [#allocation12], %s871_s18 }
  0x59   : > { %532 = vset.pattern.permute.xlu0 %v696_v5  ;;  %223 = vst.msk [vmem:[#allocation6] sm:$0xff] %vm218_vm0, %v697_v6  ;;  %v309_v53 = vstv %s454_s21  ;;  %s339_s19 = sshll.u32 %s213_s16, 4  ;;  %s456_s30 = sshll.u32 %s683_s12, 7  ;;  %s904_s19 = int_to_ptr.vmem [resolvable:$true] %s339_s19 }
  0x5a   : > { %v310_v58 = vadd.s32 %v309_v53, %v307_v51  ;;  %s909_s29 = scalar_lea.hbm %s958_s2, %s456_s30  ;;  %s326_s25 = scalar_lea.sflag [#allocation9], %s868_s15 }
  0x5b   : > { %s605_s26 = scalar_lea.vmem %s904_s19, 128  ;;  %p971_p5 = scmp.ne.s32.totalorder %s963_s22, 0 }
  0x5c   : > { %229 = vmax.xlane.f32.xlu0 %v228_v4  ;;  %vm311_vm2 = vcmp.lt.s32.totalorder %v310_v58, 16  ;;  %p606_p0 = scmp.ne.s32.totalorder %s904_s19, %s605_s26  ;;  %s698_s12 = smov [#allocation12]  }
  0x5d   : > { %s609_s3 = sshll.u32 %s698_s12, 4  ;;  %s610_s3 = int_to_ptr.vmem [resolvable:$false] %s609_s3 }
  0x5e   : > { %v254_v7 = vld [vmem:[#allocation4] sm:$0xff]  ;;  %v226_v10 = vld [vmem:[#allocation2] sm:$0xff]  ;;  %p607_p7 = pnand %p606_p0, %p971_p5  ;;  %s611_s8 = scalar_lea.vmem %s610_s3, 256 }
  0x5f   : > { %v272_v34 = vld [vmem:[#allocation5] sm:$0xff]  ;;  %v236_v39 = vld [vmem:[#allocation3] sm:$0xff]  ;;  %p612_p10 = scmp.lt.s32.totalorder %s904_s19, %s610_s3  ;;  %p613_p12 = scmp.lt.s32.totalorder %s611_s8, %s605_s26 }
  0x60   : > { %v279_v38 = vld [vmem:[#allocation6] sm:$0xff]  ;;  %p608_p4 = pneg %p607_p7 }
  0x61   : > { %p614_p1 = por %p613_p12, %p612_p10 }
  0x63   : > { %p615_p2 = pnand %p614_p1, %p608_p4 }
  0xe5   : > { %v257_v8 = vpop.xlane.xlu0 %256 }
  0xe6   : > { %v258_v9 = vmax.f32 %v254_v7, %v257_v8 }
  0xe8   : > { %v259_v11 = vsub.f32 %v254_v7, %v258_v9  ;;  %287 = vst.msk [vmem:[#allocation4] sm:$0xff] %vm218_vm0, %v258_v9  ;;  %265 = vperm.xlu1 %531, %v258_v9  }
  0xe9   : > { %v230_v12 = vpop.xlane.xlu0 %229 }
  0xea   : > { %v231_v13 = vmax.f32 %v226_v10, %v230_v12  ;;  %v260_v29 = vmul.f32 0.25, %v259_v11 }
  0xec   : > { %v232_v14 = vsub.f32 %v226_v10, %v231_v13  ;;  %253 = vst.msk [vmem:[#allocation2] sm:$0xff] %vm218_vm0, %v231_v13  ;;  %240 = vperm.xlu1 %531, %v231_v13   ;;  %v261_v30 = vmul.f32 1.442695, %v260_v29 }
  0xee   : > { %v233_v31 = vmul.f32 0.25, %v232_v14 }
  0xf0   : > { %v234_v32 = vmul.f32 1.442695, %v233_v31 }
  0xf3   : > { %v299_v54 = vld [vmem:[#allocation2] sm:$0xff] }
  0xf4   : > { %v300_v61 = vmul.f32 0.25, %v299_v54 }
 0x167   : > { %v266_v15 = vpop.permute.xlu1 %265 }
 0x168   : > { %v268_v16 = vsub.f32 %v225_v1, %v266_v15 }
 0x16a   : > { %v269_v17 = vmul.f32 0.25, %v268_v16 }
 0x16b   : > { %v241_v18 = vpop.permute.xlu1 %240 }
 0x16c   : > { %v270_v19 = vmul.f32 1.442695, %v269_v17  ;;  %v243_v20 = vsub.f32 %v224_v2, %v241_v18 }
 0x16e   : > { %533 = vpow2.f32 %v270_v19  ;;  %v244_v21 = vmul.f32 0.25, %v243_v20 }
 0x170   : > { %v245_v22 = vmul.f32 1.442695, %v244_v21 }
 0x172   : > { %535 = vpow2.f32 %v245_v22 }
 0x173   : > { %537 = vpow2.f32 %v261_v30 }
 0x174   : > { %539 = vpow2.f32 %v234_v32 }
 0x178   : > { %v534_v23 = vpop.eup %533 }
 0x179   : > { %v274_v24 = vsel %vm227_vm1, %v534_v23, 0.0  ;;  %v281_v25 = vmul.f32 %v534_v23, %v224_v2 }
 0x17a   : > { %275 = vadd.xlane.f32.xlu0 %v274_v24 }
 0x17b   : > { %v282_v27 = vsel %vm227_vm1, %v281_v25, 0.0 }
 0x17c   : > { %v536_v26 = vpop.eup %535 }
 0x17d   : > { %v247_v28 = vsel %vm227_vm1, %v536_v26, 0.0  ;;  %v538_v33 = vpop.eup %537 }
 0x17e   : > { %283 = vadd.xlane.f32.xlu0 %v282_v27  ;;  %248 = vadd.xlane.f32.xlu1 %v247_v28  ;;  %v273_v35 = vmul.f32 %v538_v33, %v272_v34  ;;  %v540_v36 = vpop.eup %539  ;;  %v280_v41 = vmul.f32 %v538_v33, %v279_v38 }
 0x17f   : > { %v237_v42 = vmul.f32 %v540_v36, %v236_v39 }
 0x207   : > { %v276_v37 = vpop.xlane.xlu0 %275 }
 0x208   : > { %v277_v40 = vadd.f32 %v276_v37, %v273_v35 }
 0x20a   : > { %278 = vst.msk [vmem:[#allocation5] sm:$0xff] %vm218_vm0, %v277_v40 }
 0x20b   : > { %v284_v43 = vpop.xlane.xlu0 %283  ;;  %v249_v44 = vpop.xlane.xlu1 %248 }
 0x20c   : > { %v285_v45 = vadd.f32 %v284_v43, %v280_v41  ;;  %v250_v46 = vadd.f32 %v249_v44, %v237_v42 }
 0x20e   : > { %286 = vst.msk [vmem:[#allocation6] sm:$0xff] %vm218_vm0, %v285_v45  ;;  %252 = vst.msk [vmem:[#allocation3] sm:$0xff] %vm218_vm0, %v250_v46 }
 0x211   : > { %v294_v47 = vld [vmem:[#allocation5] sm:$0xff] }
 0x212   : > { %541 = vrcp.f32 %v294_v47 }
 0x215   : > { %v291_v48 = vld [vmem:[#allocation3] sm:$0xff]  ;;  %v302_v55 = vld [vmem:[#allocation6] sm:$0xff] }
 0x216   : > { %543 = vlog2.f32 %v291_v48  ;;  %v303_v62 = vmul.f32 0.25, %v302_v55 }
 0x21c   : > { %v542_v50 = vpop.eup %541 }
 0x21d   : > { %v296_v52 = vmul.f32 %v542_v50, %v294_v47 }
 0x21f   : > { %v297_v56 = vsub.f32 2.0, %v296_v52 }
 0x220   : > { %v544_v57 = vpop.eup %543 }
 0x221   : > { %v293_v59 = vmul.f32 0.6931472, %v544_v57  ;;  %v298_v60 = vmul.f32 %v542_v50, %v297_v56 }
 0x223   : > { %v301_v63 = vadd.f32 %v300_v61, %v293_v59  ;;  %v304_v0 = vmul.f32 %v303_v62, %v298_v60 }
 0x225   : > { %v305_v1 = vsub.f32 %v301_v63, %v304_v0 }
 0x227   : > { %v312_v2 = vsel %vm311_vm2, %v305_v1, 0.0 }
 0x228   : > { %v313_v3 = vsel %vm218_vm0, %v312_v2, 0.0 }
 0x229   : > { %314 = vadd.xlane.f32.xlu0 %v313_v3 }
 0x2b6   : > { %v315_v4 = vpop.xlane.xlu0 %314 }
 0x2b7   : > { %v316_v5 = vrot.slane %v315_v4, 4 }
 0x2b9   : > { %v317_v6 = vadd.f32 %v316_v5, %v315_v4 }
 0x2bb   : > { %v318_v7 = vrot.slane %v317_v6, 2 }
 0x2bd   : > { %v319_v8 = vadd.f32 %v318_v7, %v317_v6 }
 0x2bf   : > { %v320_v9 = vrot.slane %v319_v8, 1 }
 0x2c1   : > { %v321_v10 = vadd.f32 %v320_v9, %v319_v8 }
 0x2c3   : > { %459 = vpush %v321_v10 }
 0x2f4   : > { %s460_s20 = spop %459 }
 0x2f5   : > { %v323_v11 = vstv %s460_s20 }
 0x2f6   : > { %324 = vst [vmem:[%s213_s16] sm:$0xff] %v323_v11 }
 0x2f7   : > { %618 = shalt.err (!%p615_p2)
}
 0x2f8   : > { %s619_s15 = scalar_lea.hbm %s909_s29, 128  ;;  %s623_s6 = scalar_lea.hbm %s958_s2, 256 }
 0x2f9   : > { %p620_p9 = scmp.ne.s32.totalorder %s909_s29, %s619_s15  ;;  %p624_p6 = scmp.lt.u32.totalorder %s909_s29, %s958_s2 }
 0x2fa   : > { %p625_p13 = scmp.lt.u32.totalorder %s623_s6, %s619_s15  ;;  %p627_p0 = scmp.lt.u32.totalorder %s619_s15, %s909_s29 }
 0x2fb   : > { %p621_p11 = pnand %p620_p9, %p971_p5 }
 0x2fc   : > { %p626_p8 = por %p625_p13, %p624_p6 }
 0x2fd   : > { %p622_p3 = pneg %p621_p11 }
 0x2fe   : > { %p628_p7 = por %p627_p0, %p626_p8 }
 0x300   : > { %p629_p4 = pnand %p628_p7, %p622_p3 }
 0x302   : > { %632 = shalt.err (!%p629_p4)
}
 0x303   : > { %465 = dma.vmem_to_hbm [thread:$0]  (%p971_p5), %s904_s19, 128, %s909_s29, %s326_s25  }
 0x304 PF: > { %s351_s21 = sand.u32 1, %s671_s9   ;;  %p972_p10 = scmp.ne.s32.totalorder %s964_s24, 0 }
 0x305   : > { %p973_p12 = scmp.ge.s32.totalorder %s691_s14, 2  ;;  %s352_s16 = scalar_lea.sflag [#allocation9], %s351_s21 }
 0x307   : > { %p475_p1 = pnand %p973_p12, %p972_p10 }
 0x309   : > { %666 = dma.done.wait (!%p475_p1), %s352_s16, 128  }
 0x30a   : > { %668 = vsyncadd (!%p475_p1), %s352_s16, 4294967168  ;;  %s21_s14 = sadd.s32 1, %s691_s14   ;;  %s974_s9 = smov %s675_s10 }
 0x30b   : > { %p18_p2 = scmp.ge.s32.totalorder %s21_s14, 4   ;;  %s975_s10 = smov %s679_s11 }
 0x30c   : > { %s976_s11 = smov %s770_s23  ;;  %s977_s12 = smov %s687_s13 }
 0x30d   : > { %s978_s13 = smov %s980_s17  ;;  %20 = sbr.rel (!%p18_p2) target bundleno = 8 (0x8), region = 94 }
 0x314   :  { %357 = vsyncpa [#allocation8], 1 }
 0x315   :  { %359 = vsyncpa [#allocation8 + $0x1], 1 }
 0x316   :  { %360 = vsyncpa [#allocation11], 1 }
 0x317   :  { %362 = vsyncpa [#allocation11 + $0x1], 1 }
 0x318   :  { %363 = vsyncpa [#allocation9], 1 }
 0x319   :  { %365 = vsyncpa [#allocation9 + $0x1], 1 }

</bundles_post_ra>
